<compile_context>
chip_gen: v7x
topology: tpu7x:2x2x1
jax: 0.10.0
libtpu: 0.0.40
codegen_flags: <defaults>
</compile_context>

<pallas_src>
import jax
import jax.numpy as jnp
from jax import lax
from jax.experimental import pallas as pl
from jax.experimental.pallas import tpu as pltpu


def mlp_kernel(x_ref, w0_ref, b0_ref, w1_ref, b1_ref, w2_ref, b2_ref, o_ref):
    """One batch tile of the MLP.

    x_ref : (TILE_B, D_in) input dtype (natural layout, batch on sublanes in HBM)
    w*_ref: (out, in)      bf16 (PyTorch nn.Linear weight layout)
    b*_ref: (out, 1)       float32
    o_ref : (2, TILE_B)    float32 softmax probabilities (batch on lanes -> lane-dense store)
    """
    cdt = w0_ref.dtype
    x = x_ref[...].astype(cdt)                           # (TILE_B, D_in), cast in-register

    # Layer 0: W0 (H0, D_in) contracted with x (TILE_B, D_in) on the last dim of both
    # -> (H0, TILE_B). Same dimension numbers as flash-attention's q @ k^T, so the MXU
    # consumes the "transposed" rhs directly and batch ends up on the 128-lane axis.
    h0 = lax.dot_general(w0_ref[...], x, (((1,), (1,)), ((), ())),
                         preferred_element_type=jnp.float32) + b0_ref[...]
    h0 = jnp.maximum(h0, 0.0)

    # Dropout(0.5) in eval mode -> identity.
    # TODO(synk): training-mode stochastic dropout (pltpu.prng_random_bits mask) not emitted.

    # Layer 1 + ReLU: (H1, H0) @ (H0, TILE_B) -> (H1, TILE_B)
    h1 = jnp.dot(w1_ref[...], h0.astype(cdt),
                 preferred_element_type=jnp.float32) + b1_ref[...]
    h1 = jnp.maximum(h1, 0.0)

    # Output layer -> logits (2, TILE_B)
    logits = jnp.dot(w2_ref[...], h1.astype(cdt),
                     preferred_element_type=jnp.float32) + b2_ref[...]

    # 2-class softmax, closed form: p1 = sigmoid(z1 - z0), p0 = 1 - p1.
    # exp and approx-reciprocal both run on the EUP slot; no cross-sublane max/sum needed.
    z0 = logits[0:1, :]
    z1 = logits[1:2, :]
    p1 = pl.reciprocal(1.0 + jnp.exp(z0 - z1), approx=True)          # (1, TILE_B)
    probs = jnp.concatenate([1.0 - p1, p1], axis=0)                  # (2, TILE_B)
    o_ref[...] = probs.astype(o_ref.dtype)                           # single unmasked-lane store


def _round_up(n, m):
    return ((n + m - 1) // m) * m


def _cdiv(a, b):
    return (a + b - 1) // b


def _choose_tiling(B, tile_cap):
    """Pick (TILE_B, nsteps, B_pad): big lane-friendly tiles, >=2 (even) steps for v7x,
    and minimal padding waste (tile ~= cdiv(B, nsteps) rounded to 128)."""
    tile_cap = max(128, _round_up(tile_cap, 128))
    b128 = _round_up(B, 128)
    if b128 <= 128:
        nsteps = 1
    else:
        nsteps = max(2, _cdiv(b128, tile_cap))   # >= 2 steps so v7x's 2 TCs both get work
        nsteps += nsteps % 2                     # even split across the 2 TensorCores
    tile_b = _round_up(_cdiv(b128, nsteps), 128)
    return tile_b, nsteps, tile_b * nsteps


def mymodule_forward(x, params, *, tile_b=32768, transpose_output=True):
    """x: (B, 20) float32 (or bf16). params: PyTorch-layout weights/biases.
    Returns (B, 2) f32 probabilities (or (2, B) if transpose_output=False)."""
    # Weights cast once to bf16 (tiny arrays; bf16 MXU operands are native on v5e/v6e/v7x).
    w0 = params["w0"].astype(jnp.bfloat16)               # (H0, D_in)
    w1 = params["w1"].astype(jnp.bfloat16)               # (H1, H0)
    w2 = params["w2"].astype(jnp.bfloat16)               # (C,  H1)
    b0 = params["b0"].reshape(-1, 1).astype(jnp.float32)
    b1 = params["b1"].reshape(-1, 1).astype(jnp.float32)
    b2 = params["b2"].reshape(-1, 1).astype(jnp.float32)

    H0, D_in = w0.shape
    H1 = w1.shape[0]
    C = w2.shape[0]
    assert C == 2, "kernel uses the 2-class closed-form softmax"
    B = x.shape[0]
    assert x.shape[1] == D_in

    TILE_B, nsteps, B_pad = _choose_tiling(B, tile_b)

    # Only pad when the batch isn't already tile-aligned (producers handing 128-aligned
    # batches pay zero extra HBM passes). No transpose, no cast of x in the wrapper.
    x_pad = x if B_pad == B else jnp.pad(x, ((0, B_pad - B), (0, 0)))

    const = lambda i: (0, 0)   # weights/biases: same block every step -> stay VMEM-resident

    out_t = pl.pallas_call(
        mlp_kernel,
        out_shape=jax.ShapeDtypeStruct((C, B_pad), jnp.float32),
        grid=(nsteps,),
        in_specs=[
            pl.BlockSpec((TILE_B, D_in), lambda i: (i, 0)),   # x: natural layout tile
            pl.BlockSpec((H0, D_in), const),
            pl.BlockSpec((H0, 1), const),
            pl.BlockSpec((H1, H0), const),
            pl.BlockSpec((H1, 1), const),
            pl.BlockSpec((C, H1), const),
            pl.BlockSpec((C, 1), const),
        ],
        out_specs=pl.BlockSpec((C, TILE_B), lambda i: (0, i)),  # lane-dense output tile
        compiler_params=pltpu.CompilerParams(
            dimension_semantics=("parallel",),   # batch axis shards across TCs on v7x
        ),
    )(x_pad, w0, b0, w1, b1, w2, b2)

    out = out_t[:, :B]
    return out.T if transpose_output else out


def mymodule_reference(x, params):
    """Plain-JAX reference of the PyTorch forward (eval mode), f32 throughout."""
    h0 = jnp.maximum(x @ params["w0"].T + params["b0"], 0.0)
    h1 = jnp.maximum(h0 @ params["w1"].T + params["b1"], 0.0)
    logits = h1 @ params["w2"].T + params["b2"]
    return jax.nn.softmax(logits, axis=-1)


def init_params(key, num_units=10):
    # Deterministic synthetic init; PyTorch nn.Linear layout: W (out, in), b (out,).
    k0, k1, k2 = jax.random.split(key, 3)
    scale = 0.1
    return {
        "w0": scale * jax.random.normal(k0, (num_units, 20), jnp.float32),
        "b0": jnp.zeros((num_units,), jnp.float32),
        "w1": scale * jax.random.normal(k1, (10, num_units), jnp.float32),
        "b1": jnp.zeros((10,), jnp.float32),
        "w2": scale * jax.random.normal(k2, (2, 10), jnp.float32),
        "b2": jnp.zeros((2,), jnp.float32),
    }


if __name__ == "__main__":
    key = jax.random.PRNGKey(0)
    kx, kp = jax.random.split(key)

    batch = 8
    x = jax.random.normal(kx, (batch, 20), jnp.float32)
    params = init_params(kp, num_units=10)

    out = mymodule_forward(x, params)
    out = jax.block_until_ready(out)
    ref = mymodule_reference(x, params)

    assert out.shape == (batch, 2)
    # softmax rows sum to 1 (exact by construction: p0 = 1 - p1)
    row_sums = jnp.sum(out, axis=-1)
    assert bool(jnp.all(jnp.abs(row_sums - 1.0) < 1e-5))
    # matches the f32 reference (tolerance covers bf16 weights + approx reciprocal)
    assert bool(jnp.all(jnp.abs(out - ref) < 3e-2))

    print("KERNEL_OK")
</pallas_src>

<mosaic_0001>
module attributes {stable_mosaic.version = 11 : i64} {
  func.func @mlp_kernel(%arg0: i32, %arg1: memref<128x20xf32, #tpu.memory_space<vmem>>, %arg2: memref<10x20xbf16, #tpu.memory_space<vmem>>, %arg3: memref<10x1xf32, #tpu.memory_space<vmem>>, %arg4: memref<10x10xbf16, #tpu.memory_space<vmem>>, %arg5: memref<10x1xf32, #tpu.memory_space<vmem>>, %arg6: memref<2x10xbf16, #tpu.memory_space<vmem>>, %arg7: memref<2x1xf32, #tpu.memory_space<vmem>>, %arg8: memref<2x128xf32, #tpu.memory_space<vmem>>) attributes {dimension_semantics = [#tpu.dimension_semantics<parallel>], iteration_bounds = array<i64: 1>, scalar_prefetch = 0 : i64, scratch_operands = 0 : i64, tpu.core_type = #tpu.core_type<tc>, window_params = [{transform_indices = @transform_0, window_bounds = array<i64: 128, 20>}, {pipeline_mode = #tpu.pipeline_mode<synchronous>, transform_indices = @transform_1, window_bounds = array<i64: 10, 20>}, {pipeline_mode = #tpu.pipeline_mode<synchronous>, transform_indices = @transform_2, window_bounds = array<i64: 10, 1>}, {pipeline_mode = #tpu.pipeline_mode<synchronous>, transform_indices = @transform_3, window_bounds = array<i64: 10, 10>}, {pipeline_mode = #tpu.pipeline_mode<synchronous>, transform_indices = @transform_4, window_bounds = array<i64: 10, 1>}, {pipeline_mode = #tpu.pipeline_mode<synchronous>, transform_indices = @transform_5, window_bounds = array<i64: 2, 10>}, {pipeline_mode = #tpu.pipeline_mode<synchronous>, transform_indices = @transform_6, window_bounds = array<i64: 2, 1>}, {transform_indices = @transform_7, window_bounds = array<i64: 2, 128>}]} {
    %c0 = arith.constant 0 : index
    %c0_0 = arith.constant 0 : index
    %0 = vector.load %arg1[%c0, %c0_0] : memref<128x20xf32, #tpu.memory_space<vmem>>, vector<128x20xf32>
    %1 = arith.truncf %0 : vector<128x20xf32> to vector<128x20xbf16>
    %c0_1 = arith.constant 0 : index
    %c0_2 = arith.constant 0 : index
    %2 = vector.load %arg2[%c0_1, %c0_2] : memref<10x20xbf16, #tpu.memory_space<vmem>>, vector<10x20xbf16>
    %cst = arith.constant dense<0.000000e+00> : vector<10x128xf32>
    %3 = tpu.matmul %2, %1, %cst {dimension_numbers = #tpu.dot_dimension_numbers<[1], [1], [0], [0], [0, 0, 1, 0], [], []>} : vector<10x20xbf16>, vector<128x20xbf16>, vector<10x128xf32> -> vector<10x128xf32>
    %c0_3 = arith.constant 0 : index
    %c0_4 = arith.constant 0 : index
    %4 = vector.load %arg3[%c0_3, %c0_4] : memref<10x1xf32, #tpu.memory_space<vmem>>, vector<10x1xf32>
    %5 = vector.broadcast %4 : vector<10x1xf32> to vector<10x128xf32>
    %6 = arith.addf %3, %5 : vector<10x128xf32>
    %cst_5 = arith.constant 0.000000e+00 : f32
    %7 = vector.broadcast %cst_5 : f32 to vector<10x128xf32>
    %8 = arith.maximumf %6, %7 : vector<10x128xf32>
    %c0_6 = arith.constant 0 : index
    %c0_7 = arith.constant 0 : index
    %9 = vector.load %arg4[%c0_6, %c0_7] : memref<10x10xbf16, #tpu.memory_space<vmem>>, vector<10x10xbf16>
    %10 = arith.truncf %8 : vector<10x128xf32> to vector<10x128xbf16>
    %cst_8 = arith.constant dense<0.000000e+00> : vector<10x128xf32>
    %11 = tpu.matmul %9, %10, %cst_8 {dimension_numbers = #tpu.dot_dimension_numbers<[1], [0], [0], [1], [0, 0, 1, 1], [], []>} : vector<10x10xbf16>, vector<10x128xbf16>, vector<10x128xf32> -> vector<10x128xf32>
    %c0_9 = arith.constant 0 : index
    %c0_10 = arith.constant 0 : index
    %12 = vector.load %arg5[%c0_9, %c0_10] : memref<10x1xf32, #tpu.memory_space<vmem>>, vector<10x1xf32>
    %13 = vector.broadcast %12 : vector<10x1xf32> to vector<10x128xf32>
    %14 = arith.addf %11, %13 : vector<10x128xf32>
    %cst_11 = arith.constant 0.000000e+00 : f32
    %15 = vector.broadcast %cst_11 : f32 to vector<10x128xf32>
    %16 = arith.maximumf %14, %15 : vector<10x128xf32>
    %c0_12 = arith.constant 0 : index
    %c0_13 = arith.constant 0 : index
    %17 = vector.load %arg6[%c0_12, %c0_13] : memref<2x10xbf16, #tpu.memory_space<vmem>>, vector<2x10xbf16>
    %18 = arith.truncf %16 : vector<10x128xf32> to vector<10x128xbf16>
    %cst_14 = arith.constant dense<0.000000e+00> : vector<2x128xf32>
    %19 = tpu.matmul %17, %18, %cst_14 {dimension_numbers = #tpu.dot_dimension_numbers<[1], [0], [0], [1], [0, 0, 1, 1], [], []>} : vector<2x10xbf16>, vector<10x128xbf16>, vector<2x128xf32> -> vector<2x128xf32>
    %c0_15 = arith.constant 0 : index
    %c0_16 = arith.constant 0 : index
    %20 = vector.load %arg7[%c0_15, %c0_16] : memref<2x1xf32, #tpu.memory_space<vmem>>, vector<2x1xf32>
    %21 = vector.broadcast %20 : vector<2x1xf32> to vector<2x128xf32>
    %22 = arith.addf %19, %21 : vector<2x128xf32>
    %23 = vector.extract_strided_slice %22 {offsets = [0, 0], sizes = [1, 128], strides = [1, 1]} : vector<2x128xf32> to vector<1x128xf32>
    %24 = vector.extract_strided_slice %22 {offsets = [1, 0], sizes = [1, 128], strides = [1, 1]} : vector<2x128xf32> to vector<1x128xf32>
    %25 = arith.subf %23, %24 : vector<1x128xf32>
    %26 = math.exp %25 : vector<1x128xf32>
    %cst_17 = arith.constant 1.000000e+00 : f32
    %27 = vector.broadcast %cst_17 : f32 to vector<1x128xf32>
    %28 = arith.addf %27, %26 : vector<1x128xf32>
    %29 = tpu.reciprocal %28 {approx = true} : vector<1x128xf32> -> vector<1x128xf32>
    %cst_18 = arith.constant 1.000000e+00 : f32
    %30 = vector.broadcast %cst_18 : f32 to vector<1x128xf32>
    %31 = arith.subf %30, %29 : vector<1x128xf32>
    %32 = tpu.concatenate %31, %29 in 0 : vector<1x128xf32>, vector<1x128xf32> -> vector<2x128xf32>
    %c0_19 = arith.constant 0 : index
    %c0_20 = arith.constant 0 : index
    %33 = vector.load %arg8[%c0_19, %c0_20] : memref<2x128xf32, #tpu.memory_space<vmem>>, vector<2x128xf32>
    tpu.vector_store %arg8[%c0_19, %c0_20], %32 {strides = array<i32>} : memref<2x128xf32, #tpu.memory_space<vmem>>, vector<2x128xf32>,
    return
  }
  func.func @transform_0(%arg0: i32) -> (i32, i32) {
    %c0_i32 = arith.constant 0 : i32
    %c0_i32_0 = arith.constant 0 : i32
    return %arg0, %c0_i32 : i32, i32
  }
  func.func @transform_1(%arg0: i32) -> (i32, i32) {
    %c0_i32 = arith.constant 0 : i32
    %c0_i32_0 = arith.constant 0 : i32
    %c0_i32_1 = arith.constant 0 : i32
    return %c0_i32, %c0_i32_0 : i32, i32
  }
  func.func @transform_2(%arg0: i32) -> (i32, i32) {
    %c0_i32 = arith.constant 0 : i32
    %c0_i32_0 = arith.constant 0 : i32
    %c0_i32_1 = arith.constant 0 : i32
    return %c0_i32, %c0_i32_0 : i32, i32
  }
  func.func @transform_3(%arg0: i32) -> (i32, i32) {
    %c0_i32 = arith.constant 0 : i32
    %c0_i32_0 = arith.constant 0 : i32
    %c0_i32_1 = arith.constant 0 : i32
    return %c0_i32, %c0_i32_0 : i32, i32
  }
  func.func @transform_4(%arg0: i32) -> (i32, i32) {
    %c0_i32 = arith.constant 0 : i32
    %c0_i32_0 = arith.constant 0 : i32
    %c0_i32_1 = arith.constant 0 : i32
    return %c0_i32, %c0_i32_0 : i32, i32
  }
  func.func @transform_5(%arg0: i32) -> (i32, i32) {
    %c0_i32 = arith.constant 0 : i32
    %c0_i32_0 = arith.constant 0 : i32
    %c0_i32_1 = arith.constant 0 : i32
    return %c0_i32, %c0_i32_0 : i32, i32
  }
  func.func @transform_6(%arg0: i32) -> (i32, i32) {
    %c0_i32 = arith.constant 0 : i32
    %c0_i32_0 = arith.constant 0 : i32
    %c0_i32_1 = arith.constant 0 : i32
    return %c0_i32, %c0_i32_0 : i32, i32
  }
  func.func @transform_7(%arg0: i32) -> (i32, i32) {
    %c0_i32 = arith.constant 0 : i32
    %c0_i32_0 = arith.constant 0 : i32
    return %c0_i32, %arg0 : i32, i32
  }
}

</mosaic_0001>

<bundles_post_ra>
// kernel: tpu_custom_call.1
= control target key start
LH: loop header
LB: loop body
LE: loop exit
PB: predicated region body
PF: predicated region fallthrough
CT: control target
= control target key end

     0   :  { %vm71_vm0 = vcmask 162816   ;;  %v382_v2 = vmov 0.0   ;;  %vm383_vm1 = vmmov 0   ;;  %v384_v6 = vmov 0   ;;  %s539_s0 = inlined_call_operand.vmem [shape: f32[128,20], index: 0, kind: input, shape index: {}]   ;;  %s540_s1 = inlined_call_operand.vmem [shape: bf16[10,20], index: 1, kind: input, shape index: {}]   ;;  %s541_s2 = inlined_call_operand.vmem [shape: f32[10,1], index: 2, kind: input, shape index: {}]   ;;  %s542_s3 = inlined_call_operand.vmem [shape: bf16[10,10], index: 3, kind: input, shape index: {}]   ;;  %s543_s4 = inlined_call_operand.vmem [shape: f32[10,1], index: 4, kind: input, shape index: {}]   ;;  %s544_s5 = inlined_call_operand.vmem [shape: bf16[2,10], index: 5, kind: input, shape index: {}]   ;;  %s545_s6 = inlined_call_operand.vmem [shape: f32[2,1], index: 6, kind: input, shape index: {}]   ;;  %s546_s7 = inlined_call_operand.hbm [shape: f32[2,128], index: 7, kind: output, shape index: {}]  }
   0x1   :  { %v28_v0 = vld [vmem:[%s539_s0] sm:$0xff]  ;;  %v29_v1 = vld [vmem:[%s539_s0 + $0x8] sm:$0xff]  ;;  %314 = vmatprep.subr.bf16.mxu0 %v382_v2  ;;  %330 = vmatprep.mubr.msk.bf16.mxu0 %vm383_vm1, %v382_v2  ;;  %v30_v4 = vld [vmem:[%s539_s0 + $0x10] sm:$0xff] }
   0x2   :  { %v44_v3 = vpack.c.bf16 %v29_v1, %v28_v0  ;;  %v31_v5 = vld [vmem:[%s539_s0 + $0x18] sm:$0xff]  ;;  %350 = vset.pattern.permute.xlu0 %v384_v6  ;;  %334 = vmatprep.subr.bf16.mxu1 %v382_v2  ;;  %v54_v9 = vld [vmem:[%s541_s2] sm:$0xff]  ;;  %v55_v10 = vld [vmem:[%s541_s2 + $0x8] sm:$0x3] }
   0x3   :  { %336 = vmatprep.mubr.msk.bf16.mxu1 %vm383_vm1, %v382_v2  ;;  %351 = vset.pattern.permute.xlu1 %v384_v6  ;;  %v45_v8 = vpack.c.bf16 %v31_v5, %v30_v4 }
   0x4   :  { %v76_v7 = vsel %vm71_vm0, %v44_v3, 0  ;;  %58 = vperm.xlu0 %350, %v54_v9  }
   0x5   :  { %315 = vmatpush3.bf16.xpose.msra.mxu0 %v76_v7  ;;  %v79_v11 = vsel %vm71_vm0, %v45_v8, 0 }
   0x6   :  { %316 = vmatprep.subr.bf16.mxu0 %v382_v2 }
   0x7   :  { %12 = vsyncpa [#allocation3], 0  ;;  %v32_v12 = vld [vmem:[%s539_s0 + $0x20] sm:$0xff]  ;;  %v33_v13 = vld [vmem:[%s539_s0 + $0x28] sm:$0xff]  ;;  %vm166_vm2 = vcmask 1044480   ;;  %vm162_vm3 = vcmask 80896  }
   0x8   :  { %63 = vperm.xlu0 %350, %v55_v10   ;;  %v215_v14 = vld [vmem:[%s545_s6] sm:$0x3]  ;;  %v46_v15 = vpack.c.bf16 %v33_v13, %v32_v12  ;;  %v34_v17 = vld [vmem:[%s539_s0 + $0x30] sm:$0xff]  ;;  %v35_v18 = vld [vmem:[%s539_s0 + $0x38] sm:$0xff]  ;;  %s385_s19 = smov [#allocation2]   ;;  %vm279_vm4 = vcmask 1040384  }
   0x9   :  { %v47_v19 = vpack.c.bf16 %v35_v18, %v34_v17  ;;  %v36_v21 = vld [vmem:[%s539_s0 + $0x40] sm:$0xff]  ;;  %v37_v22 = vld [vmem:[%s539_s0 + $0x48] sm:$0xff]  ;;  %v38_v25 = vld [vmem:[%s539_s0 + $0x50] sm:$0xff]  ;;  %s288_s20 = sshll.u32 %s385_s19, 4  ;;  %s289_s20 = int_to_ptr.vmem [resolvable:$true] %s288_s20 }
   0xa   :  { %v82_v16 = vsel %vm71_vm0, %v46_v15, 0  ;;  %v48_v23 = vpack.c.bf16 %v37_v22, %v36_v21  ;;  %v39_v26 = vld [vmem:[%s539_s0 + $0x58] sm:$0xff]  ;;  %v40_v29 = vld [vmem:[%s539_s0 + $0x60] sm:$0xff]  ;;  %v41_v30 = vld [vmem:[%s539_s0 + $0x68] sm:$0xff]  ;;  %p363_p1 = scmp.lt.s32.totalorder %s289_s20, %s289_s20 }
   0xb   :  { %v85_v20 = vsel %vm71_vm0, %v47_v19, 0  ;;  %v49_v27 = vpack.c.bf16 %v39_v26, %v38_v25  ;;  %v50_v31 = vpack.c.bf16 %v41_v30, %v40_v29  ;;  %v42_v33 = vld [vmem:[%s539_s0 + $0x70] sm:$0xff]  ;;  %v43_v34 = vld [vmem:[%s539_s0 + $0x78] sm:$0xff]  ;;  %v352_v37 = vld [vmem:[%s540_s1] sm:$0x1f]  }
   0xc   :  { %218 = vperm.xlu0 %350, %v215_v14   ;;  %v88_v24 = vsel %vm71_vm0, %v48_v23, 0  ;;  %v51_v35 = vpack.c.bf16 %v43_v34, %v42_v33  ;;  %v145_v38 = vld [vmem:[%s543_s4] sm:$0xff]  ;;  %v146_v39 = vld [vmem:[%s543_s4 + $0x8] sm:$0x3] }
   0xd   :  { %317 = vmatpush3.bf16.xpose.msra.mxu0 %v79_v11  ;;  %v91_v28 = vsel %vm71_vm0, %v49_v27, 0  ;;  %v94_v32 = vsel %vm71_vm0, %v50_v31, 0  ;;  %149 = vperm.xlu1 %351, %v145_v38   ;;  %v353_v52 = vld [vmem:[%s542_s3] sm:$0x1f]  }
   0xe   :  { %318 = vmatprep.subr.bf16.mxu0 %v382_v2  ;;  %v97_v36 = vsel %vm71_vm0, %v51_v35, 0  ;;  %v213_v1 = vld [vmem:[%s544_s5] sm:$0x1]  ;;  %s358_s5 = scalar_lea.vmem %s289_s20, 32 }
   0xf   :  { %p359_p0 = scmp.ne.s32.totalorder %s289_s20, %s358_s5  ;;  %p364_p2 = scmp.lt.s32.totalorder %s358_s5, %s358_s5 }
  0x11   :  { %154 = vperm.xlu1 %351, %v146_v39   ;;  %p365_p3 = por %p364_p2, %p363_p1 }
  0x13   :  { %p366_p4 = pnand %p365_p3, %p359_p0 }
  0x15   :  { %319 = vmatpush3.bf16.xpose.msra.mxu0 %v82_v16 }
  0x16   :  { %320 = vmatprep.subr.bf16.mxu0 %v382_v2 }
  0x1d   :  { %321 = vmatpush3.bf16.xpose.msra.mxu0 %v85_v20 }
  0x1e   :  { %322 = vmatprep.subr.bf16.mxu0 %v382_v2 }
  0x25   :  { %323 = vmatpush3.bf16.xpose.msra.mxu0 %v88_v24 }
  0x26   :  { %324 = vmatprep.subr.bf16.mxu0 %v382_v2 }
  0x2d   :  { %325 = vmatpush3.bf16.xpose.msra.mxu0 %v91_v28 }
  0x2e   :  { %326 = vmatprep.subr.bf16.mxu0 %v382_v2 }
  0x35   :  { %327 = vmatpush3.bf16.xpose.msra.mxu0 %v94_v32 }
  0x36   :  { %328 = vmatprep.subr.bf16.mxu0 %v382_v2 }
  0x3d   :  { %329 = vmatpush3.bf16.xpose.msra.mxu0 %v97_v36 }
  0x44   :  { %331 = vmatmul.mubr.msk.bf16.vlgmr.msra.gmra.mrb[0].mxu0 %vm71_vm0, %v352_v37 }
  0x83   :  { %v59_v40 = vpop.permute.xlu0 %58 }
  0x87   :  { %v64_v44 = vpop.permute.xlu0 %63 }
  0x8c   :  { %v150_v53 = vpop.permute.xlu1 %149 }
  0x90   :  { %v155_v57 = vpop.permute.xlu1 %154 }
 0x117   :  { %v133_v41 = vpop.f32.mrb[0].mxu0 }
 0x118   :  { %v134_v42 = vadd.f32 %v133_v41, %v59_v40  ;;  %v332_v43 = vpop.f32.mrb[1].mxu0 }
 0x119   :  { %v136_v45 = vpop.f32.mrb[2].mxu0 }
 0x11a   :  { %v137_v46 = vadd.f32 %v136_v45, %v64_v44  ;;  %v333_v47 = vpop.f32.mrb[3].mxu0  ;;  %v140_v48 = vmax.f32 %v134_v42, 0.0 }
 0x11c   :  { %v141_v49 = vmax.f32 %v137_v46, 0.0 }
 0x11e   :  { %v144_v50 = vpack.c.bf16 %v141_v49, %v140_v48 }
 0x120   :  { %v168_v51 = vsel %vm166_vm2, %v144_v50, 0 }
 0x121   :  { %335 = vmatpush3.bf16.msra.mxu1 %v168_v51 }
 0x122   :  { %340 = vmatprep.subr.bf16.mxu1 %v382_v2 }
 0x124   :  { %337 = vmatmul.mubr.msk.bf16.vlgmr.msra.gmra.mrb[0].mxu1 %vm162_vm3, %v353_v52 }
 0x125   :  { %342 = vmatprep.mubr.msk.bf16.mxu1 %vm383_vm1, %v382_v2  ;;  %v219_v2 = vpop.permute.xlu0 %218 }
 0x1f7   :  { %v204_v54 = vpop.f32.mrb[0].mxu1 }
 0x1f8   :  { %v205_v55 = vadd.f32 %v204_v54, %v150_v53  ;;  %v338_v56 = vpop.f32.mrb[1].mxu1 }
 0x1f9   :  { %v207_v58 = vpop.f32.mrb[2].mxu1 }
 0x1fa   :  { %v208_v59 = vadd.f32 %v207_v58, %v155_v57  ;;  %v339_v60 = vpop.f32.mrb[3].mxu1  ;;  %v211_v61 = vmax.f32 %v205_v55, 0.0 }
 0x1fc   :  { %v212_v62 = vmax.f32 %v208_v59, 0.0 }
 0x1fe   :  { %v214_v63 = vpack.c.bf16 %v212_v62, %v211_v61 }
 0x200   :  { %v225_v0 = vsel %vm166_vm2, %v214_v63, 0 }
 0x201   :  { %341 = vmatpush3.bf16.msra.mxu1 %v225_v0 }
 0x204   :  { %343 = vmatmul.mubr.msk.bf16.vlgmr.msra.gmra.mrb[4].mxu1 %vm162_vm3, %v213_v1 }
 0x2d7   :  { %v261_v3 = vpop.f32.mrb[4].mxu1 }
 0x2d8   :  { %v262_v4 = vadd.f32 %v261_v3, %v219_v2  ;;  %v344_v5 = vpop.f32.mrb[5].mxu1 }
 0x2d9   :  { %v264_v6 = vpop.f32.mrb[6].mxu1 }
 0x2da   :  { %v268_v7 = vrot.slane %v262_v4, 1  ;;  %v345_v8 = vpop.f32.mrb[7].mxu1 }
 0x2dc   :  { %v270_v9 = vsub.f32 %v262_v4, %v268_v7 }
 0x2de   :  { %v271_v10 = vmul.f32 1.442695, %v270_v9 }
 0x2e0   :  { %354 = vpow2.f32 %v271_v10 }
 0x2ea   :  { %v355_v11 = vpop.eup %354 }
 0x2eb   :  { %v273_v12 = vadd.f32 1.0, %v355_v11 }
 0x2ed   :  { %356 = vrcp.f32 %v273_v12 }
 0x2f7   :  { %v357_v13 = vpop.eup %356 }
 0x2f8   :  { %v275_v14 = vsub.f32 1.0, %v357_v13  ;;  %v277_v15 = vrot.slane %v357_v13, 7 }
 0x2fa   :  { %v280_v16 = vsel %vm279_vm4, %v275_v14, %v277_v15 }
 0x2fb   :  { %281 = vst [vmem:[#allocation2] sm:$0x3] %v280_v16 }
 0x2fc   :  { %369 = shalt.err (!%p366_p4)
}
 0x2fd   :  { %s370_s22 = scalar_lea.hbm %s546_s7, 32 }
 0x2fe   :  { %p371_p5 = scmp.ne.s32.totalorder %s546_s7, %s370_s22  ;;  %p374_p6 = scmp.lt.u32.totalorder %s370_s22, %s546_s7 }
 0x300   :  { %p376_p7 = pnand %p374_p6, %p371_p5 }
 0x302   :  { %379 = shalt.err (!%p376_p7)
}
 0x303   :  { %291 = dma.vmem_to_hbm [thread:$0]  %s289_s20, 32, %s546_s7, [#allocation3]  }
 0x304   :  { %380 = dma.done.wait [#allocation3], 32  }
 0x305   :  { %381 = vsyncadd [#allocation3], 4294967264 }
 0x306   :  { %295 = vsyncpa [#allocation3], 1 }

</bundles_post_ra>
